<compile_context>
chip_gen: v7x
topology: tpu7x:2x2x1
jax: 0.10.0
libtpu: 0.0.40
codegen_flags: <defaults>
</compile_context>

<pallas_src>
import functools

import jax
import jax.numpy as jnp
from jax.experimental import pallas as pl
from jax.experimental.pallas import tpu as pltpu


def _channel_attention_kernel(x_ref, w1_ref, w2_ref, o_ref, max_acc, sum_acc,
                              *, HW, HW_TILE, LANE, N_HW, C_CHUNK=128):
    # x_ref:  [1, C, HW_TILE] block of the flattened feature map
    # w1_ref: [Cr, C]   w2_ref: [C, Cr]   o_ref: [1, C, 1]
    # max_acc: VMEM (C, LANE) input dtype; sum_acc: VMEM (C, LANE) float32
    C = x_ref.shape[1]
    hw_step = pl.program_id(1)
    last = N_HW - 1
    ragged = (HW % HW_TILE) != 0        # static
    n_groups = HW_TILE // LANE          # static
    fill = float(jnp.finfo(x_ref.dtype).min)   # finite min: safe w/o inf encoding
    inv_hw = 1.0 / float(HW)

    @pl.when(hw_step == 0)
    def _init():
        max_acc[...] = jnp.full_like(max_acc, fill)
        sum_acc[...] = jnp.zeros_like(sum_acc)

    def accumulate(mask_tail):
        # Fold the (C, HW_TILE) tile to (C, LANE) in registers (VPU only),
        # then a single rmw into the narrow VMEM accumulators.
        base = last * HW_TILE if mask_tail else 0  # static inside the tail branch
        for c0 in range(0, C, C_CHUNK):
            csz = min(C_CHUNK, C - c0)
            m = None
            s = None
            for g in range(n_groups):
                if mask_tail:
                    rem = HW - (base + g * LANE)   # static
                    if rem <= 0:
                        continue                   # group entirely past H*W
                else:
                    rem = LANE
                xg = x_ref[0, c0:c0 + csz, g * LANE:(g + 1) * LANE]  # (csz, LANE)
                if rem < LANE:
                    lane = jax.lax.broadcasted_iota(jnp.int32, (csz, LANE), 1)
                    valid = lane < rem
                    xm = jnp.where(valid, xg, fill)
                    xs = jnp.where(valid, xg.astype(jnp.float32), 0.0)
                else:
                    xm = xg
                    xs = xg.astype(jnp.float32)
                m = xm if m is None else jnp.maximum(m, xm)
                s = xs if s is None else s + xs
            max_acc[c0:c0 + csz, :] = jnp.maximum(
                max_acc[c0:c0 + csz, :], m.astype(max_acc.dtype))
            sum_acc[c0:c0 + csz, :] = sum_acc[c0:c0 + csz, :] + s

    if not ragged:
        accumulate(False)
    elif N_HW == 1:
        accumulate(True)
    else:
        @pl.when(hw_step < last)
        def _body():
            accumulate(False)

        @pl.when(hw_step == last)
        def _tail():
            accumulate(True)

    @pl.when(hw_step == last)
    def _finalize():
        # Single cross-lane (XLU) reduce over the 128-wide accumulators.
        max_pool = jnp.max(max_acc[...], axis=-1,
                           keepdims=True).astype(jnp.float32)        # [C, 1]
        avg_pool = jnp.sum(sum_acc[...], axis=-1, keepdims=True) * inv_hw  # [C, 1]
        pooled = jnp.concatenate([max_pool, avg_pool], axis=-1)      # [C, 2]

        w1 = w1_ref[...].astype(jnp.float32)                         # [Cr, C]
        w2 = w2_ref[...].astype(jnp.float32)                         # [C, Cr]

        # Fused SE: one matmul pair covers both (max, avg) branches.
        h = jnp.maximum(
            jnp.dot(w1, pooled, preferred_element_type=jnp.float32), 0.0)  # [Cr, 2]
        s_out = jnp.dot(w2, h, preferred_element_type=jnp.float32)         # [C, 2]

        out = jax.nn.sigmoid(s_out[:, 0:1] + s_out[:, 1:2])          # [C, 1]
        o_ref[0] = out.astype(o_ref.dtype)


def _pick_hw_tile(HW, C, itemsize, *, single_buf_budget=8 << 20, max_groups=128):
    """Lane-tile width: multiple of 128 (or full extent), sized by VMEM budget."""
    if HW <= 128:
        return HW                       # full-extent block is always legal
    hw_pad = ((HW + 127) // 128) * 128
    by_budget = max((single_buf_budget // (C * itemsize)) // 128 * 128, 128)
    return int(min(hw_pad, by_budget, 128 * max_groups))


def channel_attention(x, w1, w2, *, hw_tile=None):
    """x: [B, C, H, W] (NCHW).  Returns [B, C, 1, 1] like the PyTorch module.

    w1: [C//r, C]  (Conv2d(C, C//r, 1, bias=False) weight, squeezed)
    w2: [C, C//r]  (Conv2d(C//r, C, 1, bias=False) weight, squeezed)
    """
    B, C, H, W = x.shape
    Cr = w1.shape[0]
    assert w1.shape == (Cr, C) and w2.shape == (C, Cr)

    HW = H * W
    x_item = jnp.dtype(x.dtype).itemsize
    w_item = jnp.dtype(w1.dtype).itemsize

    if hw_tile is None:
        hw_tile = _pick_hw_tile(HW, C, x_item)
    assert hw_tile == HW or hw_tile % 128 == 0, hw_tile
    LANE = min(hw_tile, 128)
    n_hw = pl.cdiv(HW, hw_tile)

    x_flat = x.reshape(B, C, HW)

    # Explicit VMEM budget (review items 2/3): input double buffer + narrow
    # accumulators + weights (double-buffered by default) + output + headroom.
    vmem_bytes = (2 * C * hw_tile * x_item
                  + C * LANE * (4 + x_item)
                  + 2 * 2 * C * Cr * w_item
                  + 2 * C * x_item
                  + (2 << 20))
    vmem_limit = int(min(max(vmem_bytes, 16 << 20), 40 << 20))

    kernel = functools.partial(
        _channel_attention_kernel, HW=HW, HW_TILE=hw_tile, LANE=LANE, N_HW=n_hw)

    out = pl.pallas_call(
        kernel,
        out_shape=jax.ShapeDtypeStruct((B, C, 1), x.dtype),
        grid=(B, n_hw),
        in_specs=[
            pl.BlockSpec((1, C, hw_tile), lambda b, h: (b, 0, h)),
            pl.BlockSpec((Cr, C), lambda b, h: (0, 0)),
            pl.BlockSpec((C, Cr), lambda b, h: (0, 0)),
        ],
        out_specs=pl.BlockSpec((1, C, 1), lambda b, h: (b, 0, 0)),
        scratch_shapes=[
            pltpu.VMEM((C, LANE), x.dtype),       # running max (narrow)
            pltpu.VMEM((C, LANE), jnp.float32),   # running f32 sum (narrow)
        ],
        compiler_params=pltpu.CompilerParams(
            dimension_semantics=("parallel", "arbitrary"),
            vmem_limit_bytes=vmem_limit),
    )(x_flat, w1, w2)

    return out.reshape(B, C, 1, 1)


def channel_attention_ref(x, w1, w2):
    """Pure-JAX reference mirroring the PyTorch forward."""
    xf = x.astype(jnp.float32)
    max_pool = jnp.max(xf, axis=(2, 3))   # [B, C]
    avg_pool = jnp.mean(xf, axis=(2, 3))  # [B, C]

    def se(p):
        h = jnp.maximum(p @ w1.T.astype(jnp.float32), 0.0)
        return h @ w2.T.astype(jnp.float32)

    out = jax.nn.sigmoid(se(max_pool) + se(avg_pool))
    return out.reshape(*out.shape, 1, 1).astype(x.dtype)


def _run_case(key, B, C, Cr, H, W, hw_tile=None):
    kx, k1, k2 = jax.random.split(key, 3)
    x = jax.random.normal(kx, (B, C, H, W), dtype=jnp.float32)
    # Conv2d(C, Cr, 1, bias=False) weight [Cr, C, 1, 1] -> stored as [Cr, C].
    w1 = jax.random.normal(k1, (Cr, C), dtype=jnp.float32) * (2.0 / C) ** 0.5
    # Conv2d(Cr, C, 1, bias=False) weight [C, Cr, 1, 1] -> stored as [C, Cr].
    w2 = jax.random.normal(k2, (C, Cr), dtype=jnp.float32) * (2.0 / Cr) ** 0.5

    out = channel_attention(x, w1, w2, hw_tile=hw_tile)
    out = jax.block_until_ready(out)
    ref = channel_attention_ref(x, w1, w2)

    assert out.shape == (B, C, 1, 1), out.shape
    err = jnp.max(jnp.abs(out - ref))
    assert jnp.allclose(out, ref, atol=1e-4, rtol=1e-4), (
        f"mismatch vs reference: max abs err = {err}")


if __name__ == "__main__":
    key = jax.random.PRNGKey(0)
    k0, k1 = jax.random.split(key)

    # Case 1: channel=32, reduction=4 -> hidden=8; whole H*W in one step.
    _run_case(k0, B=2, C=32, Cr=8, H=16, W=16)

    # Case 2: forced small tile -> multi-step streaming reduction with a
    # ragged (masked) trailing tile, and B=1 batch.
    _run_case(k1, B=1, C=16, Cr=4, H=17, W=17, hw_tile=128)

    print("KERNEL_OK")
</pallas_src>

<mosaic_0001>
module attributes {stable_mosaic.version = 11 : i64} {
  func.func @_channel_attention_kernel(%arg0: i32, %arg1: i32, %arg2: memref<1x32x256xf32, #tpu.memory_space<vmem>>, %arg3: memref<8x32xf32, #tpu.memory_space<vmem>>, %arg4: memref<32x8xf32, #tpu.memory_space<vmem>>, %arg5: memref<1x32x1xf32, #tpu.memory_space<vmem>>, %arg6: memref<32x128xf32, #tpu.memory_space<vmem>>, %arg7: memref<32x128xf32, #tpu.memory_space<vmem>>) attributes {dimension_semantics = [#tpu.dimension_semantics<parallel>, #tpu.dimension_semantics<arbitrary>], iteration_bounds = array<i64: 2, 1>, scalar_prefetch = 0 : i64, scratch_operands = 2 : i64, tpu.core_type = #tpu.core_type<tc>, window_params = [{transform_indices = @transform_0, window_bounds = array<i64: 1, 32, 256>}, {pipeline_mode = #tpu.pipeline_mode<synchronous>, transform_indices = @transform_1, window_bounds = array<i64: 8, 32>}, {pipeline_mode = #tpu.pipeline_mode<synchronous>, transform_indices = @transform_2, window_bounds = array<i64: 32, 8>}, {transform_indices = @transform_3, window_bounds = array<i64: 1, 32, 1>}]} {
    %c0_i32 = arith.constant 0 : i32
    %0 = arith.cmpi eq, %arg1, %c0_i32 : i32
    %1 = arith.extui %0 : i1 to i32
    %c0_i32_0 = arith.constant 0 : i32
    %2 = arith.cmpi ne, %1, %c0_i32_0 : i32
    scf.if %2 {
      %cst = arith.constant -3.40282347E+38 : f32
      %18 = vector.broadcast %cst : f32 to vector<32x128xf32>
      %c0_15 = arith.constant 0 : index
      %c0_16 = arith.constant 0 : index
      %19 = vector.load %arg6[%c0_15, %c0_16] : memref<32x128xf32, #tpu.memory_space<vmem>>, vector<32x128xf32>
      tpu.vector_store %arg6[%c0_15, %c0_16], %18 {strides = array<i32>} : memref<32x128xf32, #tpu.memory_space<vmem>>, vector<32x128xf32>,
      %cst_17 = arith.constant 0.000000e+00 : f32
      %20 = vector.broadcast %cst_17 : f32 to vector<32x128xf32>
      %c0_18 = arith.constant 0 : index
      %c0_19 = arith.constant 0 : index
      %21 = vector.load %arg7[%c0_18, %c0_19] : memref<32x128xf32, #tpu.memory_space<vmem>>, vector<32x128xf32>
      tpu.vector_store %arg7[%c0_18, %c0_19], %20 {strides = array<i32>} : memref<32x128xf32, #tpu.memory_space<vmem>>, vector<32x128xf32>,
    } else {
    }
    %c0 = arith.constant 0 : index
    %c0_1 = arith.constant 0 : index
    %c0_2 = arith.constant 0 : index
    %3 = vector.load %arg2[%c0, %c0_1, %c0_2] : memref<1x32x256xf32, #tpu.memory_space<vmem>>, vector<1x32x128xf32>
    %4 = vector.shape_cast %3 : vector<1x32x128xf32> to vector<32x128xf32>
    %c0_3 = arith.constant 0 : index
    %c0_4 = arith.constant 0 : index
    %c128 = arith.constant 128 : index
    %5 = vector.load %arg2[%c0_3, %c0_4, %c128] : memref<1x32x256xf32, #tpu.memory_space<vmem>>, vector<1x32x128xf32>
    %6 = vector.shape_cast %5 : vector<1x32x128xf32> to vector<32x128xf32>
    %7 = arith.maximumf %4, %6 : vector<32x128xf32>
    %8 = arith.addf %4, %6 : vector<32x128xf32>
    %c0_5 = arith.constant 0 : index
    %c0_6 = arith.constant 0 : index
    %9 = vector.load %arg6[%c0_5, %c0_6] : memref<32x128xf32, #tpu.memory_space<vmem>>, vector<32x128xf32>
    %10 = arith.maximumf %9, %7 : vector<32x128xf32>
    %c0_7 = arith.constant 0 : index
    %c0_8 = arith.constant 0 : index
    %11 = vector.load %arg6[%c0_7, %c0_8] : memref<32x128xf32, #tpu.memory_space<vmem>>, vector<32x128xf32>
    tpu.vector_store %arg6[%c0_7, %c0_8], %10 {strides = array<i32>} : memref<32x128xf32, #tpu.memory_space<vmem>>, vector<32x128xf32>,
    %c0_9 = arith.constant 0 : index
    %c0_10 = arith.constant 0 : index
    %12 = vector.load %arg7[%c0_9, %c0_10] : memref<32x128xf32, #tpu.memory_space<vmem>>, vector<32x128xf32>
    %13 = arith.addf %12, %8 : vector<32x128xf32>
    %c0_11 = arith.constant 0 : index
    %c0_12 = arith.constant 0 : index
    %14 = vector.load %arg7[%c0_11, %c0_12] : memref<32x128xf32, #tpu.memory_space<vmem>>, vector<32x128xf32>
    tpu.vector_store %arg7[%c0_11, %c0_12], %13 {strides = array<i32>} : memref<32x128xf32, #tpu.memory_space<vmem>>, vector<32x128xf32>,
    %c0_i32_13 = arith.constant 0 : i32
    %15 = arith.cmpi eq, %arg1, %c0_i32_13 : i32
    %16 = arith.extui %15 : i1 to i32
    %c0_i32_14 = arith.constant 0 : i32
    %17 = arith.cmpi ne, %16, %c0_i32_14 : i32
    scf.if %17 {
      %c0_15 = arith.constant 0 : index
      %c0_16 = arith.constant 0 : index
      %18 = vector.load %arg6[%c0_15, %c0_16] : memref<32x128xf32, #tpu.memory_space<vmem>>, vector<32x128xf32>
      %cst = arith.constant dense<0xFF800000> : vector<32xf32>
      %19 = vector.multi_reduction <maximumf>, %18, %cst [1] : vector<32x128xf32> to vector<32xf32>
      %20 = vector.shape_cast %19 : vector<32xf32> to vector<32x1xf32>
      %c0_17 = arith.constant 0 : index
      %c0_18 = arith.constant 0 : index
      %21 = vector.load %arg7[%c0_17, %c0_18] : memref<32x128xf32, #tpu.memory_space<vmem>>, vector<32x128xf32>
      %cst_19 = arith.constant dense<0.000000e+00> : vector<32xf32>
      %22 = vector.multi_reduction <add>, %21, %cst_19 [1] : vector<32x128xf32> to vector<32xf32>
      %23 = vector.shape_cast %22 : vector<32xf32> to vector<32x1xf32>
      %cst_20 = arith.constant 3.906250e-03 : f32
      %24 = vector.broadcast %cst_20 : f32 to vector<32x1xf32>
      %25 = arith.mulf %23, %24 : vector<32x1xf32>
      %26 = tpu.concatenate %20, %25 in 1 : vector<32x1xf32>, vector<32x1xf32> -> vector<32x2xf32>
      %c0_21 = arith.constant 0 : index
      %c0_22 = arith.constant 0 : index
      %27 = vector.load %arg3[%c0_21, %c0_22] : memref<8x32xf32, #tpu.memory_space<vmem>>, vector<8x32xf32>
      %c0_23 = arith.constant 0 : index
      %c0_24 = arith.constant 0 : index
      %28 = vector.load %arg4[%c0_23, %c0_24] : memref<32x8xf32, #tpu.memory_space<vmem>>, vector<32x8xf32>
      %cst_25 = arith.constant dense<0.000000e+00> : vector<8x2xf32>
      %29 = tpu.matmul %27, %26, %cst_25 {dimension_numbers = #tpu.dot_dimension_numbers<[1], [0], [0], [1], [0, 0, 1, 1], [], []>} : vector<8x32xf32>, vector<32x2xf32>, vector<8x2xf32> -> vector<8x2xf32>
      %cst_26 = arith.constant 0.000000e+00 : f32
      %30 = vector.broadcast %cst_26 : f32 to vector<8x2xf32>
      %31 = arith.maximumf %29, %30 : vector<8x2xf32>
      %cst_27 = arith.constant dense<0.000000e+00> : vector<32x2xf32>
      %32 = tpu.matmul %28, %31, %cst_27 {dimension_numbers = #tpu.dot_dimension_numbers<[1], [0], [0], [1], [0, 0, 1, 1], [], []>} : vector<32x8xf32>, vector<8x2xf32>, vector<32x2xf32> -> vector<32x2xf32>
      %33 = vector.extract_strided_slice %32 {offsets = [0, 0], sizes = [32, 1], strides = [1, 1]} : vector<32x2xf32> to vector<32x1xf32>
      %34 = vector.extract_strided_slice %32 {offsets = [0, 1], sizes = [32, 1], strides = [1, 1]} : vector<32x2xf32> to vector<32x1xf32>
      %35 = arith.addf %33, %34 : vector<32x1xf32>
      %36 = arith.negf %35 : vector<32x1xf32>
      %37 = math.exp %36 : vector<32x1xf32>
      %cst_28 = arith.constant 1.000000e+00 : f32
      %38 = vector.broadcast %cst_28 : f32 to vector<32x1xf32>
      %39 = arith.addf %38, %37 : vector<32x1xf32>
      %40 = arith.divf %38, %39 : vector<32x1xf32>
      %c0_29 = arith.constant 0 : index
      %c0_30 = arith.constant 0 : index
      %c0_31 = arith.constant 0 : index
      %41 = vector.load %arg5[%c0_29, %c0_30, %c0_31] : memref<1x32x1xf32, #tpu.memory_space<vmem>>, vector<1x32x1xf32>
      %42 = vector.shape_cast %41 : vector<1x32x1xf32> to vector<32x1xf32>
      %43 = vector.shape_cast %40 : vector<32x1xf32> to vector<1x32x1xf32>
      tpu.vector_store %arg5[%c0_29, %c0_30, %c0_31], %43 {strides = array<i32>} : memref<1x32x1xf32, #tpu.memory_space<vmem>>, vector<1x32x1xf32>,
    } else {
    }
    return
  }
  func.func @transform_0(%arg0: i32, %arg1: i32) -> (i32, i32, i32) {
    %c0_i32 = arith.constant 0 : i32
    %c0_i32_0 = arith.constant 0 : i32
    return %arg0, %c0_i32, %arg1 : i32, i32, i32
  }
  func.func @transform_1(%arg0: i32, %arg1: i32) -> (i32, i32) {
    %c0_i32 = arith.constant 0 : i32
    %c0_i32_0 = arith.constant 0 : i32
    %c0_i32_1 = arith.constant 0 : i32
    return %c0_i32, %c0_i32_0 : i32, i32
  }
  func.func @transform_2(%arg0: i32, %arg1: i32) -> (i32, i32) {
    %c0_i32 = arith.constant 0 : i32
    %c0_i32_0 = arith.constant 0 : i32
    %c0_i32_1 = arith.constant 0 : i32
    return %c0_i32, %c0_i32_0 : i32, i32
  }
  func.func @transform_3(%arg0: i32, %arg1: i32) -> (i32, i32, i32) {
    %c0_i32 = arith.constant 0 : i32
    %c0_i32_0 = arith.constant 0 : i32
    %c0_i32_1 = arith.constant 0 : i32
    return %arg0, %c0_i32, %c0_i32_0 : i32, i32, i32
  }
}

</mosaic_0001>

<bundles_post_ra>
// kernel: tpu_custom_call.1
= control target key start
LH: loop header
LB: loop body
LE: loop exit
PB: predicated region body
PF: predicated region fallthrough
CT: control target
= control target key end

     0   :  { %8 = vsyncpa [#allocation5], 0  ;;  %s992_s0 = inlined_call_operand.hbm [shape: f32[2,32,256], index: 0, kind: input, shape index: {}]   ;;  %s993_s1 = inlined_call_operand.vmem [shape: f32[8,32], index: 1, kind: input, shape index: {}]   ;;  %s994_s2 = inlined_call_operand.vmem [shape: f32[32,8], index: 2, kind: input, shape index: {}]   ;;  %s995_s3 = inlined_call_operand.vmem [shape: f32[2,32,1], index: 3, kind: output, shape index: {}]  }
   0x1   :  { %10 = vsyncpa [#allocation5 + $0x1], 0  ;;  %s845_s12 = smov 0   ;;  %s847_s13 = smov 0  }
   0x2   :  { %s849_s14 = smov 0   ;;  %s851_s15 = smov 0  }
   0x3   :  { %s853_s16 = smov 0   ;;  %s855_s17 = smov 0  }
   0x4 LB: > { %s600_s18 = sadd.s32 4294967295, %s816_s17   ;;  %s28_s19 = sadd.s32 1, %s812_s16  ;;  %s816_s17 = sphi %s855_s17, %s16_s17   ;;  %s812_s16 = sphi %s853_s16, %s1003_s16   ;;  %s808_s15 = sphi %s851_s15, %s1002_s15   ;;  %s804_s14 = sphi %s849_s14, %s1001_s14   ;;  %s800_s13 = sphi %s847_s13, %s1000_s13   ;;  %s796_s12 = sphi %s845_s12, %s999_s12  }
   0x5   : > { %p30_p0 = scmp.ge.s32.totalorder %s28_s19, 2  ;;  %s37_s20 = sadd.s32 1, %s804_s14 }
   0x6   : > { %p44_p1 = scmp.ne.s32.totalorder %s804_s14, %s800_s13  ;;  %p45_p2 = scmp.eq.s32.totalorder %s816_s17, 0 }
   0x7   : > { %s1005_s19 = smov (%p30_p0, %s28_s19), 0  ;;  %p50_p4 = scmp.ne.s32.totalorder %s800_s13, %s796_s12 }
   0x8   : > { %p881_p3 = por %p45_p2, %p44_p1  ;;  %s32_s22 = ssub.s32 %s812_s16, %s1005_s19 }
   0x9   : > { %p51_p5 = scmp.eq.s32.totalorder %s600_s18, 0  ;;  %p35_p6 = scmp.eq.s32.totalorder %s32_s22, 0 }
   0xa   : > { %p665_p8 = scmp.lt.s32.totalorder %s816_s17, 2  ;;  %s148_s25 = sand.u32 1, %s804_s14  }
   0xb   : > { %p888_p7 = por %p51_p5, %p50_p4  ;;  %s622_s26 = sshll.u32 %s812_s16, 10 }
   0xc   : > { %s894_s24 = scalar_select %p35_p6, %s804_s14, %s37_s20  }
   0xd   : > { %s604_s27 = sshll.u32 %s148_s25, 6  ;;  %s901_s30 = scalar_lea.hbm %s992_s0, %s622_s26 }
   0xe   : > { %s152_s4 = scalar_lea.vmem [#allocation4], %s604_s27  ;;  %p905_p9 = pnand %p665_p8, %p881_p3 }
   0xf   : > { %s161_s5 = sshll.u32 %s152_s4, 4  ;;  %s911_s7 = scalar_lea.sflag [#allocation5], %s148_s25  ;;  %s909_s5 = int_to_ptr.vmem [resolvable:$true] %s161_s5 }
  0x10   : > { %s736_s8 = scalar_lea.hbm %s901_s30, 1024  ;;  %p738_p11 = pneg %p905_p9 }
  0x11   : > { %p737_p10 = scmp.ne.s32.totalorder %s901_s30, %s736_s8  ;;  %s741_s11 = scalar_lea.hbm %s992_s0, 2048 }
  0x12   : > { %p742_p0 = scmp.lt.u32.totalorder %s901_s30, %s992_s0  ;;  %p743_p1 = scmp.lt.u32.totalorder %s741_s11, %s736_s8 }
  0x13   : > { %p739_p12 = pnand %p738_p11, %p737_p10  ;;  %p745_p3 = scmp.lt.u32.totalorder %s736_s8, %s901_s30 }
  0x14   : > { %p744_p2 = por %p743_p1, %p742_p0 }
  0x15   : > { %p740_p13 = pneg %p739_p12 }
  0x16   : > { %p746_p4 = por %p745_p3, %p744_p2 }
  0x18   : > { %p747_p5 = pnand %p746_p4, %p740_p13 }
  0x1a   : > { %750 = shalt.err (!%p747_p5)
}
  0x1b   : > { %s751_s20 = scalar_lea.vmem %s909_s5, 1024  ;;  %s818_s21 = smov [#allocation4]  }
  0x1c   : > { %p752_p6 = scmp.ne.s32.totalorder %s909_s5, %s751_s20  ;;  %s756_s22 = sshll.u32 %s818_s21, 4  ;;  %s757_s22 = int_to_ptr.vmem [resolvable:$false] %s756_s22 }
  0x1d   : > { %s758_s25 = scalar_lea.vmem %s757_s22, 2048  ;;  %p759_p12 = scmp.lt.s32.totalorder %s909_s5, %s757_s22 }
  0x1e   : > { %p754_p8 = pnand %p752_p6, %p738_p11  ;;  %p760_p0 = scmp.lt.s32.totalorder %s758_s25, %s751_s20 }
  0x20   : > { %p755_p10 = pneg %p754_p8  ;;  %p761_p1 = por %p760_p0, %p759_p12 }
  0x22   : > { %p762_p2 = pnand %p761_p1, %p755_p10 }
  0x24   : > { %765 = shalt.err (!%p762_p2)
}
  0x25   : > { %s819_s26 = smov 256   ;;  %s820_s27 = smov 16  }
  0x26   : > { %664 = dma.hbm_to_vmem [thread:$0]  (!%p905_p9), %s901_s30, 1024, %s909_s5, %s911_s7, %s819_s26, %s819_s26, %s820_s27  }
  0x27   : > { %p607_p11 = scmp.ge.s32.totalorder %s816_s17, 1  ;;  %p169_p13 = scmp.lt.s32.totalorder %s816_s17, 3 }
  0x29   : > { %p170_p3 = pnand %p607_p11, %p169_p13 }
  0x2a   : > { %s175_s28 = sand.u32 (!%p170_p3), 1, %s800_s13  }
  0x2b   : > { %173 = sbr.rel (%p170_p3) target bundleno = 796 (0x31c), region = 32  ;;  %s608_s29 = sshll.u32 (!%p170_p3), %s175_s28, 6 }
  0x2c   : > { %s176_s4 = scalar_lea.sflag (!%p170_p3), [#allocation5], %s175_s28  ;;  %s179_s8 = scalar_lea.vmem (!%p170_p3), [#allocation4], %s608_s29 }
  0x32   : > { %791 = dma.done.wait (%p888_p7), %s176_s4, 1024  }
  0x33   : > { %793 = vsyncadd (%p888_p7), %s176_s4, 4294966272  ;;  %v223_v0 = vld [vmem:[%s179_s8 + $0x30] sm:$0xff]  ;;  %v227_v1 = vld [vmem:[%s179_s8 + $0x38] sm:$0xff]  ;;  %v821_v20 = vmov 0.0|0.0   ;;  %vm822_vm0 = vmmov 0   ;;  %v823_v21 = vmov 0.0  }
  0x34   : > { %v220_v2 = vld [vmem:[%s179_s8] sm:$0xff]  ;;  %v235_v3 = vadd.f32 %v227_v1, %v223_v0  ;;  %v224_v4 = vld [vmem:[%s179_s8 + $0x8] sm:$0xff]  ;;  %v221_v5 = vld [vmem:[%s179_s8 + $0x10] sm:$0xff]  ;;  %v231_v15 = vmax.f32 %v223_v0, %v227_v1  ;;  %653 = vmatprep.subr.bf16.mxu0 %v821_v20  ;;  %642 = vmatprep.mubr.msk.f32.mxu0 %vm822_vm0, %v823_v21  ;;  %vm291_vm1 = vcmask 7168   ;;  %vm301_vm2 = vcmask 261120   ;;  %s824_s20 = smov 127  }
  0x35   : > { %v225_v6 = vld [vmem:[%s179_s8 + $0x18] sm:$0xff]  ;;  %v232_v7 = vadd.f32 %v224_v4, %v220_v2  ;;  %v228_v8 = vmax.f32 %v220_v2, %v224_v4  ;;  %v222_v12 = vld [vmem:[%s179_s8 + $0x20] sm:$0xff]  ;;  %v226_v13 = vld [vmem:[%s179_s8 + $0x28] sm:$0xff]  ;;  %vm376_vm3 = vcmask 64512   ;;  %p203_p7 = scmp.lt.s32.totalorder %s808_s15, 1 }
  0x36   : > { %285 = vadd.xlane.f32.xlu1 %v235_v3  ;;  %v229_v9 = vmax.f32 %v221_v5, %v225_v6  ;;  %v233_v10 = vadd.f32 %v225_v6, %v221_v5  ;;  %v234_v16 = vadd.f32 %v226_v13, %v222_v12  ;;  %v230_v17 = vmax.f32 %v222_v12, %v226_v13  ;;  %v296_v40 = vld [vmem:[%s993_s1] sm:$0xff]  ;;  %v298_v45 = vld [vmem:[%s994_s2 + $0x8] sm:$0xff]  ;;  %v299_v46 = vld [vmem:[%s994_s2 + $0x10] sm:$0xff] }
  0x37   : > { %279 = vadd.xlane.f32.xlu0 %v232_v7  ;;  %v240_v11 = vmax.f32 %v228_v8, -3.4028235e+38  ;;  %v243_v18 = vmax.f32 %v231_v15, -3.4028235e+38  ;;  %v297_v41 = vld [vmem:[%s994_s2] sm:$0xff]  ;;  %v300_v47 = vld [vmem:[%s994_s2 + $0x18] sm:$0xff] }
  0x38   : > { %v241_v14 = vmax.f32 %v229_v9, -3.4028235e+38  ;;  %v242_v19 = vmax.f32 %v230_v17, -3.4028235e+38  ;;  %647 = vmatprep.mubr.msk.f32.mxu1 %vm376_vm3, %v297_v41  ;;  %s1007_s15 = smov (!%p203_p7, %s808_s15), 1 }
  0x39   : > { %s623_s21 = sshll.u32 %s1007_s15, 5 }
  0x3a   : > { %267 = vmax.xlane.f32.xlu1 %v240_v11  ;;  %s207_s26 = scalar_lea.vmem %s995_s3, %s623_s21 }
  0x3b   : > { %281 = vadd.xlane.f32.xlu0 %v233_v10 }
  0x3e   : > { %269 = vmax.xlane.f32.xlu1 %v241_v14 }
  0x3f   : > { %283 = vadd.xlane.f32.xlu0 %v234_v16 }
  0x42   : > { %273 = vmax.xlane.f32.xlu1 %v243_v18 }
  0x43   : > { %271 = vmax.xlane.f32.xlu0 %v242_v19 }
  0xc3   : > { %v286_v22 = vpop.xlane.xlu1 %285 }
  0xc4   : > { %v280_v23 = vpop.xlane.xlu0 %279  ;;  %v290_v33 = vmul.f32 0.00390625, %v286_v22 }
  0xc5   : > { %v287_v26 = vmul.f32 0.00390625, %v280_v23 }
  0xc7   : > { %v268_v24 = vpop.xlane.xlu1 %267 }
  0xc8   : > { %v282_v25 = vpop.xlane.xlu0 %281  ;;  %v292_v29 = vsel %vm291_vm1, %v268_v24, %v287_v26 }
  0xc9   : > { %v288_v27 = vmul.f32 0.00390625, %v282_v25 }
  0xcb   : > { %v270_v28 = vpop.xlane.xlu1 %269 }
  0xcc   : > { %v284_v30 = vpop.xlane.xlu0 %283  ;;  %v293_v31 = vsel %vm291_vm1, %v270_v28, %v288_v27 }
  0xcd   : > { %v654_v32 = vpack.c.bf16 %v293_v31, %v292_v29  ;;  %v289_v34 = vmul.f32 0.00390625, %v284_v30 }
  0xcf   : > { %655 = vmatpush3.bf16.msra.mxu0 %v654_v32  ;;  %v274_v35 = vpop.xlane.xlu1 %273 }
  0xd0   : > { %v272_v36 = vpop.xlane.xlu0 %271  ;;  %v295_v37 = vsel %vm291_vm1, %v274_v35, %v290_v33  ;;  %656 = vmatprep.subr.bf16.mxu0 %v821_v20 }
  0xd1   : > { %v294_v38 = vsel %vm291_vm1, %v272_v36, %v289_v34 }
  0xd2   : > { %v657_v39 = vpack.c.bf16 %v295_v37, %v294_v38 }
  0xd4   : > { %658 = vmatpush3.bf16.msra.mxu0 %v657_v39 }
  0xd7   : > { %643 = vmatmul.mubr.msk.f32.vlgmr.msra.gmra.mrb[0].mxu0 %vm301_vm2, %v296_v40 }
 0x1aa   : > { %v371_v42 = vpop.f32.mrb[0].mxu0 }
 0x1ab   : > { %v375_v43 = vmax.f32 %v371_v42, 0.0  ;;  %v644_v44 = vpop.f32.mrb[1].mxu0 }
 0x1ad   : > { %645 = vmatprep.subr.mxu1 %v375_v43 }
 0x1ae   : > { %646 = vmatpush3.msra.mxu1 %v375_v43 }
 0x1af   : > { %648 = vmatmul.mubr.msk.f32.vlgmr.msra.gmra.mrb[0].mxu1 %vm376_vm3, %v298_v45 }
 0x1b0   : > { %650 = vmatprep.mubr.msk.f32.mxu1 %vm376_vm3, %v299_v46 }
 0x1b3   : > { %651 = vmatmul.mubr.msk.f32.gmra.mrb[2].mxu1 %vm376_vm3, %v300_v47 }
 0x282   : > { %v649_v48 = vpop.f32.mrb[0].mxu1 }
 0x283   : > { %480 = vrot.lane.b32.xlu1 %v649_v48, %s824_s20  ;;  %v455_v49 = vpop.f32.mrb[1].mxu1 }
 0x284   : > { %478 = vrot.lane.b32.xlu0 %v455_v49, %s824_s20 }
 0x286   : > { %v652_v50 = vpop.f32.mrb[2].mxu1 }
 0x287   : > { %v465_v51 = vpop.f32.mrb[3].mxu1 }
 0x288   : > { %482 = vrot.lane.b32.xlu1 %v465_v51, %s824_s20 }
 0x28c   : > { %484 = vrot.lane.b32.xlu1 %v652_v50, %s824_s20 }
 0x2f5   : > { %v481_v52 = vpop.permute.xlu1 %480 }
 0x2f6   : > { %v491_v53 = vadd.f32 %v649_v48, %v481_v52  ;;  %v479_v54 = vpop.permute.xlu0 %478 }
 0x2f7   : > { %v490_v55 = vadd.f32 %v479_v54, %v455_v49 }
 0x2f8   : > { %v617_v56 = vmul.f32 -1.442695, %v491_v53 }
 0x2f9   : > { %v616_v57 = vmul.f32 -1.442695, %v490_v55 }
 0x2fa   : > { %720 = vpow2.f32 %v617_v56  ;;  %v483_v58 = vpop.permute.xlu1 %482 }
 0x2fb   : > { %722 = vpow2.f32 %v616_v57  ;;  %v492_v59 = vadd.f32 %v483_v58, %v465_v51 }
 0x2fd   : > { %v618_v60 = vmul.f32 -1.442695, %v492_v59 }
 0x2fe   : > { %v485_v61 = vpop.permute.xlu1 %484 }
 0x2ff   : > { %724 = vpow2.f32 %v618_v60  ;;  %v493_v62 = vadd.f32 %v652_v50, %v485_v61 }
 0x301   : > { %v619_v63 = vmul.f32 -1.442695, %v493_v62 }
 0x303   : > { %726 = vpow2.f32 %v619_v63 }
 0x304   : > { %v721_v0 = vpop.eup %720 }
 0x305   : > { %v723_v1 = vpop.eup %722  ;;  %v507_v2 = vadd.f32 1.0, %v721_v0 }
 0x306   : > { %v506_v3 = vadd.f32 1.0, %v723_v1 }
 0x307   : > { %728 = vrcp.f32 %v507_v2 }
 0x308   : > { %730 = vrcp.f32 %v506_v3 }
 0x309   : > { %v725_v4 = vpop.eup %724 }
 0x30a   : > { %v508_v5 = vadd.f32 1.0, %v725_v4 }
 0x30c   : > { %732 = vrcp.f32 %v508_v5 }
 0x30d   : > { %v727_v6 = vpop.eup %726 }
 0x30e   : > { %v509_v7 = vadd.f32 1.0, %v727_v6 }
 0x310   : > { %734 = vrcp.f32 %v509_v7 }
 0x311   : > { %v729_v8 = vpop.eup %728 }
 0x312   : > { %v731_v9 = vpop.eup %730  ;;  %519 = vst.msk [vmem:[%s207_s26 + $0x8] sm:$0xff] %vm291_vm1, %v729_v8 }
 0x313   : > { %518 = vst.msk [vmem:[%s207_s26] sm:$0xff] %vm291_vm1, %v731_v9 }
 0x316   : > { %v733_v10 = vpop.eup %732 }
 0x317   : > { %520 = vst.msk [vmem:[%s207_s26 + $0x10] sm:$0xff] %vm291_vm1, %v733_v10 }
 0x31a   : > { %v735_v11 = vpop.eup %734 }
 0x31b   : > { %521 = vst.msk [vmem:[%s207_s26 + $0x18] sm:$0xff] %vm291_vm1, %v735_v11 }
 0x31c PF: > { %s16_s17 = sadd.s32 1, %s816_s17   ;;  %s999_s12 = smov %s800_s13 }
 0x31d   : > { %p13_p9 = scmp.ge.s32.totalorder %s16_s17, 4   ;;  %s1000_s13 = smov %s804_s14 }
 0x31e   : > { %s1001_s14 = smov %s894_s24  ;;  %s1002_s15 = smov %s812_s16 }
 0x31f   : > { %s1003_s16 = smov %s1005_s19  ;;  %15 = sbr.rel (!%p13_p9) target bundleno = 4 (0x4), region = 80 }
 0x326   :  { %543 = vsyncpa [#allocation5], 1 }
 0x327   :  { %545 = vsyncpa [#allocation5 + $0x1], 1 }

</bundles_post_ra>
